<compile_context>
chip_gen: v7x
topology: tpu7x:2x2x1
jax: 0.10.0
libtpu: 0.0.40
codegen_flags: <defaults>
</compile_context>

<pallas_src>
import functools

import numpy as np
import jax
import jax.numpy as jnp
from jax.experimental import pallas as pl
from jax.experimental.pallas import tpu as pltpu


# --------------------------- operator construction (host) ---------------------------
def _gaussian_1d(scale):
    """Replicates AntiAliasInterpolation2d.__init__ for one spatial direction."""
    sigma = (1.0 / scale - 1.0) / 2.0
    ks = 2 * round(sigma * 4) + 1
    ka = ks // 2                      # odd kernel -> kb == ka
    r = int(1.0 / scale)              # module: int(inv_scale)
    mgrid = np.arange(ks, dtype=np.float32)
    mean = (ks - 1) / 2.0
    g = np.exp(-((mgrid - mean) ** 2) / (2.0 * sigma ** 2)).astype(np.float32)
    g = g / g.sum()                   # 2D kernel = outer(g, g), already normalized
    return g, ka, r


def _strided_blur_matrix(g, ka, r, size, out_size):
    """M[i, o] = g[k] where i = o*r + k - ka (zero padding folded in by clipping)."""
    ks = g.shape[0]
    m = np.zeros((size, out_size), np.float32)
    for o in range(out_size):
        for k in range(ks):
            i = o * r + k - ka
            if 0 <= i < size:
                m[i, o] = g[k]
    return m


# ----------------------------------- Pallas kernel ----------------------------------
def _pyramid_kernel(x_ref, *refs, n_scales):
    """Fused multi-scale anti-aliased downsample of one batch block.

    x_ref : (Bb, H, W)  bf16 input block (channels folded into B = N*C)
    refs  : aw_0, ah_0, ..., aw_{S-1}, ah_{S-1}, out_0, ..., out_{S-1}
            aw_s : (W, Wout_s) bf16   strided-Gaussian operator, W direction
            ah_s : (H, Hout_s) bf16   strided-Gaussian operator, H direction
            out_s: (Bb, Wout_s, Hout_s)  output block (H/W swapped; fixed up in the
                   wrapper, which is pure XLA layout plumbing)
    """
    op_refs, out_refs = refs[:2 * n_scales], refs[2 * n_scales:]
    bb, h, w = x_ref.shape
    x2 = x_ref[...].reshape(bb * h, w)              # leading-dim collapse only
    for s in range(n_scales):
        aw_ref = op_refs[2 * s]
        ah_ref = op_refs[2 * s + 1]
        out_ref = out_refs[s]
        wout = aw_ref.shape[1]
        hout = ah_ref.shape[1]
        # W pass: ONE dense MXU matmul over all Bb*H rows (pad + stride folded in aw).
        t = jnp.dot(x2, aw_ref[...], preferred_element_type=jnp.float32)   # (Bb*H, Wout)
        # Minor-most transpose (XLU work) so the H pass is also ONE dense matmul.
        t3 = jnp.swapaxes(t.reshape(bb, h, wout), -1, -2)                  # (Bb, Wout, H)
        t2 = t3.reshape(bb * wout, h).astype(jnp.bfloat16)
        # H pass: (Bb*Wout, H) @ (H, Hout), large M for MXU row occupancy.
        o = jnp.dot(t2, ah_ref[...], preferred_element_type=jnp.float32)   # (Bb*Wout, Hout)
        out_ref[...] = o.reshape(bb, wout, hout).astype(out_ref.dtype)


# ------------------------------------- wrappers --------------------------------------
def _vmem_limit_bytes():
    # Raise the scoped-VMEM limit for double buffering, but stay v7x-safe
    # (64 MiB physical): never request more than min(48 MiB, 75% of capacity).
    try:
        cap = getattr(pltpu.get_tpu_info(), "vmem_capacity_bytes", None)
        if cap:
            return int(min(48 * 1024 * 1024, cap * 3 // 4))
    except Exception:
        pass
    return 32 * 1024 * 1024


def _pick_block_b(B, H, W, outs_hw, out_itemsize, budget_bytes=24 * 1024 * 1024):
    """Largest divisor of B whose double-buffered per-step working set fits the budget,
    preferring blocks whose W-pass M dim (block_b*H) is a multiple of 256 (MXU rows)."""
    def step_bytes(bb):
        n = bb * H * W * 2                                   # bf16 x block
        for hout, wout in outs_hw:
            n += bb * H * wout * 4                           # f32 W-pass intermediate
            n += bb * wout * H * (4 + 2)                     # transpose + bf16 copy
            n += bb * wout * hout * max(4, out_itemsize)     # f32 acc / output block
        return n
    divisors = [d for d in range(1, B + 1) if B % d == 0]
    fits = [d for d in divisors if 2 * step_bytes(d) <= budget_bytes]
    if not fits:
        return 1
    aligned = [d for d in fits if (d * H) % 256 == 0]
    return max(aligned) if aligned else max(fits)


def image_pyramid_pallas(x_nchw, scales, block_b=None):
    """Pallas equivalent of ImagePyramid.forward: dict of 'prediction_<scale>' arrays."""
    N, C, H, W = x_nchw.shape
    B = N * C
    out = {}
    ds_scales = []
    for s in scales:
        if float(s) == 1.0:
            out['prediction_' + str(s)] = x_nchw       # identity branch of the module
        else:
            ds_scales.append(s)
    if not ds_scales:
        return out

    # Strided-Gaussian operators: pad + depthwise blur + ::r subsample per direction.
    ops, outs_hw = [], []
    for s in ds_scales:
        g, ka, r = _gaussian_1d(s)
        Hout, Wout = -(-H // r), -(-W // r)            # == len(range(0, dim, r))
        ops.append(jnp.asarray(_strided_blur_matrix(g, ka, r, W, Wout), jnp.bfloat16))
        ops.append(jnp.asarray(_strided_blur_matrix(g, ka, r, H, Hout), jnp.bfloat16))
        outs_hw.append((Hout, Wout))

    if block_b is None:
        block_b = _pick_block_b(B, H, W, outs_hw, jnp.dtype(x_nchw.dtype).itemsize)
    assert B % block_b == 0, (B, block_b)
    grid = (B // block_b,)

    x_b = x_nchw.reshape(B, H, W).astype(jnp.bfloat16)   # bf16 streaming, f32 accum

    in_specs = [pl.BlockSpec((block_b, H, W), lambda b: (b, 0, 0))]
    for op in ops:                                       # constant index_map -> resident
        in_specs.append(pl.BlockSpec(op.shape, lambda b: (0, 0)))

    out_shape, out_specs = [], []
    for Hout, Wout in outs_hw:
        out_shape.append(jax.ShapeDtypeStruct((B, Wout, Hout), x_nchw.dtype))
        out_specs.append(pl.BlockSpec((block_b, Wout, Hout), lambda b: (b, 0, 0)))

    kernel = functools.partial(_pyramid_kernel, n_scales=len(ds_scales))
    results = pl.pallas_call(
        kernel,
        grid=grid,
        out_shape=tuple(out_shape),
        in_specs=in_specs,
        out_specs=tuple(out_specs),
        compiler_params=pltpu.CompilerParams(
            dimension_semantics=("parallel",),
            vmem_limit_bytes=_vmem_limit_bytes()),
    )(x_b, *ops)
    if not isinstance(results, (list, tuple)):
        results = (results,)

    for s, (Hout, Wout), res in zip(ds_scales, outs_hw, results):
        # (B, Wout, Hout) -> (N, C, Hout, Wout): wrapper-side layout plumbing only.
        out['prediction_' + str(s)] = jnp.swapaxes(res, 1, 2).reshape(N, C, Hout, Wout)
    return out


# ------------------------------- pure-JAX reference ----------------------------------
def anti_alias_downsample_ref(x, scale):
    if float(scale) == 1.0:
        return x
    N, C, H, W = x.shape
    g, ka, r = _gaussian_1d(scale)
    k2 = np.outer(g, g).astype(np.float32)                       # normalized 2D kernel
    w = jnp.asarray(np.tile(k2[None, None], (C, 1, 1, 1)))       # (C, 1, ks, ks)
    xp = jnp.pad(x.astype(jnp.float32), ((0, 0), (0, 0), (ka, ka), (ka, ka)))
    out = jax.lax.conv_general_dilated(
        xp, w, window_strides=(1, 1), padding='VALID',
        dimension_numbers=('NCHW', 'OIHW', 'NCHW'), feature_group_count=C)
    return out[:, :, ::r, ::r]


def image_pyramid_ref(x, scales):
    return {'prediction_' + str(s): anti_alias_downsample_ref(x, s) for s in scales}


# --------------------------------------- main ----------------------------------------
if __name__ == "__main__":
    key = jax.random.PRNGKey(0)
    N, C, H, W = 2, 4, 16, 16
    x = jax.random.normal(key, (N, C, H, W), jnp.float32)
    scales = (1.0, 0.5, 0.25)

    # block_b=4 splits B=8 into a 2-step grid, exercising the pipelined/parallel path.
    outs = image_pyramid_pallas(x, scales, block_b=4)
    outs = jax.block_until_ready(outs)

    refs = image_pyramid_ref(x, scales)
    # bf16-streamed inputs/operators with f32 accumulation -> ~1e-2 tolerance vs f32 ref.
    for k in sorted(refs):
        a, b = outs[k], refs[k]
        if a.shape != b.shape:
            raise AssertionError(f"{k}: shape mismatch {a.shape} vs {b.shape}")
        a = a.astype(b.dtype)
        if not jnp.allclose(a, b, atol=1e-2, rtol=1e-2):
            max_err = float(jnp.max(jnp.abs(a - b)))
            raise AssertionError(f"{k}: Pallas ImagePyramid mismatch, max err {max_err}")

    print("KERNEL_OK")
</pallas_src>

<mosaic_0001>
module attributes {stable_mosaic.version = 11 : i64} {
  func.func @_pyramid_kernel(%arg0: i32, %arg1: memref<4x16x16xbf16, #tpu.memory_space<vmem>>, %arg2: memref<16x8xbf16, #tpu.memory_space<vmem>>, %arg3: memref<16x8xbf16, #tpu.memory_space<vmem>>, %arg4: memref<16x4xbf16, #tpu.memory_space<vmem>>, %arg5: memref<16x4xbf16, #tpu.memory_space<vmem>>, %arg6: memref<4x8x8xf32, #tpu.memory_space<vmem>>, %arg7: memref<4x4x4xf32, #tpu.memory_space<vmem>>) attributes {dimension_semantics = [#tpu.dimension_semantics<parallel>], iteration_bounds = array<i64: 2>, scalar_prefetch = 0 : i64, scratch_operands = 0 : i64, tpu.core_type = #tpu.core_type<tc>, window_params = [{transform_indices = @transform_0, window_bounds = array<i64: 4, 16, 16>}, {pipeline_mode = #tpu.pipeline_mode<synchronous>, transform_indices = @transform_1, window_bounds = array<i64: 16, 8>}, {pipeline_mode = #tpu.pipeline_mode<synchronous>, transform_indices = @transform_2, window_bounds = array<i64: 16, 8>}, {pipeline_mode = #tpu.pipeline_mode<synchronous>, transform_indices = @transform_3, window_bounds = array<i64: 16, 4>}, {pipeline_mode = #tpu.pipeline_mode<synchronous>, transform_indices = @transform_4, window_bounds = array<i64: 16, 4>}, {transform_indices = @transform_5, window_bounds = array<i64: 4, 8, 8>}, {transform_indices = @transform_6, window_bounds = array<i64: 4, 4, 4>}]} {
    %c0 = arith.constant 0 : index
    %c0_0 = arith.constant 0 : index
    %c0_1 = arith.constant 0 : index
    %0 = vector.load %arg1[%c0, %c0_0, %c0_1] : memref<4x16x16xbf16, #tpu.memory_space<vmem>>, vector<4x16x16xbf16>
    %1 = vector.shape_cast %0 : vector<4x16x16xbf16> to vector<64x16xbf16>
    %c0_2 = arith.constant 0 : index
    %c0_3 = arith.constant 0 : index
    %2 = vector.load %arg2[%c0_2, %c0_3] : memref<16x8xbf16, #tpu.memory_space<vmem>>, vector<16x8xbf16>
    %cst = arith.constant dense<0.000000e+00> : vector<64x8xf32>
    %3 = tpu.matmul %1, %2, %cst {dimension_numbers = #tpu.dot_dimension_numbers<[1], [0], [0], [1], [0, 0, 1, 1], [], []>} : vector<64x16xbf16>, vector<16x8xbf16>, vector<64x8xf32> -> vector<64x8xf32>
    %4 = vector.shape_cast %3 : vector<64x8xf32> to vector<4x16x8xf32>
    %5 = tpu.transpose %4, [0, 2, 1] : vector<4x16x8xf32> -> vector<4x8x16xf32>
    %6 = vector.shape_cast %5 : vector<4x8x16xf32> to vector<32x16xf32>
    %7 = arith.truncf %6 : vector<32x16xf32> to vector<32x16xbf16>
    %c0_4 = arith.constant 0 : index
    %c0_5 = arith.constant 0 : index
    %8 = vector.load %arg3[%c0_4, %c0_5] : memref<16x8xbf16, #tpu.memory_space<vmem>>, vector<16x8xbf16>
    %cst_6 = arith.constant dense<0.000000e+00> : vector<32x8xf32>
    %9 = tpu.matmul %7, %8, %cst_6 {dimension_numbers = #tpu.dot_dimension_numbers<[1], [0], [0], [1], [0, 0, 1, 1], [], []>} : vector<32x16xbf16>, vector<16x8xbf16>, vector<32x8xf32> -> vector<32x8xf32>
    %10 = vector.shape_cast %9 : vector<32x8xf32> to vector<4x8x8xf32>
    %c0_7 = arith.constant 0 : index
    %c0_8 = arith.constant 0 : index
    %c0_9 = arith.constant 0 : index
    %11 = vector.load %arg6[%c0_7, %c0_8, %c0_9] : memref<4x8x8xf32, #tpu.memory_space<vmem>>, vector<4x8x8xf32>
    tpu.vector_store %arg6[%c0_7, %c0_8, %c0_9], %10 {strides = array<i32>} : memref<4x8x8xf32, #tpu.memory_space<vmem>>, vector<4x8x8xf32>,
    %c0_10 = arith.constant 0 : index
    %c0_11 = arith.constant 0 : index
    %12 = vector.load %arg4[%c0_10, %c0_11] : memref<16x4xbf16, #tpu.memory_space<vmem>>, vector<16x4xbf16>
    %cst_12 = arith.constant dense<0.000000e+00> : vector<64x4xf32>
    %13 = tpu.matmul %1, %12, %cst_12 {dimension_numbers = #tpu.dot_dimension_numbers<[1], [0], [0], [1], [0, 0, 1, 1], [], []>} : vector<64x16xbf16>, vector<16x4xbf16>, vector<64x4xf32> -> vector<64x4xf32>
    %14 = vector.shape_cast %13 : vector<64x4xf32> to vector<4x16x4xf32>
    %15 = tpu.transpose %14, [0, 2, 1] : vector<4x16x4xf32> -> vector<4x4x16xf32>
    %16 = vector.shape_cast %15 : vector<4x4x16xf32> to vector<16x16xf32>
    %17 = arith.truncf %16 : vector<16x16xf32> to vector<16x16xbf16>
    %c0_13 = arith.constant 0 : index
    %c0_14 = arith.constant 0 : index
    %18 = vector.load %arg5[%c0_13, %c0_14] : memref<16x4xbf16, #tpu.memory_space<vmem>>, vector<16x4xbf16>
    %cst_15 = arith.constant dense<0.000000e+00> : vector<16x4xf32>
    %19 = tpu.matmul %17, %18, %cst_15 {dimension_numbers = #tpu.dot_dimension_numbers<[1], [0], [0], [1], [0, 0, 1, 1], [], []>} : vector<16x16xbf16>, vector<16x4xbf16>, vector<16x4xf32> -> vector<16x4xf32>
    %20 = vector.shape_cast %19 : vector<16x4xf32> to vector<4x4x4xf32>
    %c0_16 = arith.constant 0 : index
    %c0_17 = arith.constant 0 : index
    %c0_18 = arith.constant 0 : index
    %21 = vector.load %arg7[%c0_16, %c0_17, %c0_18] : memref<4x4x4xf32, #tpu.memory_space<vmem>>, vector<4x4x4xf32>
    tpu.vector_store %arg7[%c0_16, %c0_17, %c0_18], %20 {strides = array<i32>} : memref<4x4x4xf32, #tpu.memory_space<vmem>>, vector<4x4x4xf32>,
    return
  }
  func.func @transform_0(%arg0: i32) -> (i32, i32, i32) {
    %c0_i32 = arith.constant 0 : i32
    %c0_i32_0 = arith.constant 0 : i32
    %c0_i32_1 = arith.constant 0 : i32
    return %arg0, %c0_i32, %c0_i32_0 : i32, i32, i32
  }
  func.func @transform_1(%arg0: i32) -> (i32, i32) {
    %c0_i32 = arith.constant 0 : i32
    %c0_i32_0 = arith.constant 0 : i32
    %c0_i32_1 = arith.constant 0 : i32
    return %c0_i32, %c0_i32_0 : i32, i32
  }
  func.func @transform_2(%arg0: i32) -> (i32, i32) {
    %c0_i32 = arith.constant 0 : i32
    %c0_i32_0 = arith.constant 0 : i32
    %c0_i32_1 = arith.constant 0 : i32
    return %c0_i32, %c0_i32_0 : i32, i32
  }
  func.func @transform_3(%arg0: i32) -> (i32, i32) {
    %c0_i32 = arith.constant 0 : i32
    %c0_i32_0 = arith.constant 0 : i32
    %c0_i32_1 = arith.constant 0 : i32
    return %c0_i32, %c0_i32_0 : i32, i32
  }
  func.func @transform_4(%arg0: i32) -> (i32, i32) {
    %c0_i32 = arith.constant 0 : i32
    %c0_i32_0 = arith.constant 0 : i32
    %c0_i32_1 = arith.constant 0 : i32
    return %c0_i32, %c0_i32_0 : i32, i32
  }
  func.func @transform_5(%arg0: i32) -> (i32, i32, i32) {
    %c0_i32 = arith.constant 0 : i32
    %c0_i32_0 = arith.constant 0 : i32
    %c0_i32_1 = arith.constant 0 : i32
    return %arg0, %c0_i32, %c0_i32_0 : i32, i32, i32
  }
  func.func @transform_6(%arg0: i32) -> (i32, i32, i32) {
    %c0_i32 = arith.constant 0 : i32
    %c0_i32_0 = arith.constant 0 : i32
    %c0_i32_1 = arith.constant 0 : i32
    return %arg0, %c0_i32, %c0_i32_0 : i32, i32, i32
  }
}

</mosaic_0001>

<bundles_post_ra>
// kernel: tpu_custom_call.1
= control target key start
LH: loop header
LB: loop body
LE: loop exit
PB: predicated region body
PF: predicated region fallthrough
CT: control target
= control target key end

     0   :  { %12 = vsyncpa [#allocation3], 0  ;;  %s1499_s0 = inlined_call_operand.hbm [shape: bf16[8,16,16], index: 0, kind: input, shape index: {}]   ;;  %s1500_s1 = inlined_call_operand.vmem [shape: bf16[16,8], index: 1, kind: input, shape index: {}]   ;;  %s1501_s2 = inlined_call_operand.vmem [shape: bf16[16,8], index: 2, kind: input, shape index: {}]   ;;  %s1502_s3 = inlined_call_operand.vmem [shape: bf16[16,4], index: 3, kind: input, shape index: {}]   ;;  %s1503_s4 = inlined_call_operand.vmem [shape: bf16[16,4], index: 4, kind: input, shape index: {}]   ;;  %s1504_s5 = inlined_call_operand.hbm [shape: f32[8,8,8], index: 5, kind: output, shape index: {0}]   ;;  %s1505_s6 = inlined_call_operand.vmem [shape: f32[8,4,4], index: 6, kind: output, shape index: {1}]  }
   0x1   :  { %14 = vsyncpa [#allocation3 + $0x1], 0 }
   0x2   :  { %15 = vsyncpa [#allocation4], 0 }
   0x3   :  { %17 = vsyncpa [#allocation4 + $0x1], 0  ;;  %s1299_s21 = smov 0   ;;  %s1301_s22 = smov 0  }
   0x4   :  { %s1303_s23 = smov 0   ;;  %s1305_s24 = smov 0  }
   0x5 LB: > { %s1320_s25 = sadd.s32 4294967295, %s1254_s24   ;;  %s994_s26 = sadd.s32 4294967294, %s1254_s24   ;;  %s1254_s24 = sphi %s1305_s24, %s1518_s24   ;;  %s1250_s23 = sphi %s1303_s23, %s1517_s23   ;;  %s1246_s22 = sphi %s1301_s22, %s1516_s22   ;;  %s1242_s21 = sphi %s1299_s21, %s1515_s21  }
   0x6   : > { %s1324_s27 = sadd.s32 1, %s1254_s24   ;;  %s30_s28 = sadd.s32 1, %s1250_s23 }
   0x7   : > { %s27_s29 = ssub.s32 %s1254_s24, %s1324_s27  ;;  %p37_p0 = scmp.ne.s32.totalorder %s1250_s23, %s1246_s22 }
   0x8   : > { %p28_p1 = scmp.eq.s32.totalorder %s27_s29, 0  ;;  %p38_p2 = scmp.eq.s32.totalorder %s1254_s24, 0 }
   0x9   : > { %p43_p3 = scmp.ne.s32.totalorder %s1246_s22, %s1242_s21  ;;  %p44_p4 = scmp.eq.s32.totalorder %s1320_s25, 0 }
   0xa   : > { %s1336_s30 = scalar_select %p28_p1, %s1250_s23, %s30_s28  }
   0xb   : > { %p1338_p5 = por %p38_p2, %p37_p0  ;;  %p1342_p6 = por %p44_p4, %p43_p3 }
   0xc   : > { %p151_p7 = scmp.eq.s32.totalorder %s1320_s25, 1  ;;  %p157_p8 = scmp.eq.s32.totalorder %s994_s26, 1 }
   0xd   : > { %p1092_p10 = scmp.lt.s32.totalorder %s1254_s24, 2  ;;  %s215_s11 = sand.u32 1, %s1250_s23  }
   0xe   : > { %p1349_p11 = por %p151_p7, %p37_p0  ;;  %p1353_p12 = por %p157_p8, %p43_p3 }
   0xf   : > { %s1031_s12 = sshll.u32 %s1254_s24, 9  ;;  %s997_s13 = sshll.u32 %s215_s11, 5 }
  0x10   : > { %s1509_s9 = scalar_select %p1349_p11, 1, 0 }
  0x11   : > { %s1510_s10 = scalar_select %p1353_p12, 1, 0 }
  0x12   : > { %s1362_s16 = scalar_lea.hbm %s1499_s0, %s1031_s12  ;;  %s219_s17 = scalar_lea.vmem [#allocation2], %s997_s13 }
  0x13   : > { %s227_s18 = sshll.u32 %s219_s17, 4  ;;  %p1366_p13 = pnand %p1092_p10, %p1338_p5  ;;  %s1370_s18 = int_to_ptr.vmem [resolvable:$true] %s227_s18 }
  0x14   : > { %s1372_s20 = scalar_lea.sflag [#allocation3], %s215_s11  ;;  %s1158_s26 = scalar_lea.hbm %s1362_s16, 512 }
  0x15   : > { %p1159_p0 = scmp.ne.s32.totalorder %s1362_s16, %s1158_s26  ;;  %p1160_p1 = pneg %p1366_p13 }
  0x16   : > { %s1163_s7 = scalar_lea.hbm %s1499_s0, 1024  ;;  %p1164_p4 = scmp.lt.u32.totalorder %s1362_s16, %s1499_s0 }
  0x17   : > { %p1161_p2 = pnand %p1160_p1, %p1159_p0  ;;  %p1165_p5 = scmp.lt.u32.totalorder %s1163_s7, %s1158_s26 }
  0x18   : > { %p1167_p8 = scmp.lt.u32.totalorder %s1158_s26, %s1362_s16 }
  0x19   : > { %p1162_p3 = pneg %p1161_p2  ;;  %p1166_p7 = por %p1165_p5, %p1164_p4 }
  0x1b   : > { %p1168_p10 = por %p1167_p8, %p1166_p7 }
  0x1d   : > { %p1169_p9 = pnand %p1168_p10, %p1162_p3 }
  0x1f   : > { %1172 = shalt.err (!%p1169_p9)
}
  0x20   : > { %s1173_s11 = scalar_lea.vmem %s1370_s18, 512  ;;  %s1256_s14 = smov [#allocation2]  }
  0x21   : > { %p1174_p0 = scmp.ne.s32.totalorder %s1370_s18, %s1173_s11  ;;  %s1178_s15 = sshll.u32 %s1256_s14, 4  ;;  %s1179_s15 = int_to_ptr.vmem [resolvable:$false] %s1178_s15 }
  0x22   : > { %s1180_s17 = scalar_lea.vmem %s1179_s15, 1024  ;;  %p1181_p11 = scmp.lt.s32.totalorder %s1370_s18, %s1179_s15 }
  0x23   : > { %p1176_p2 = pnand %p1174_p0, %p1160_p1  ;;  %p1182_p4 = scmp.lt.s32.totalorder %s1180_s17, %s1173_s11 }
  0x25   : > { %p1177_p12 = pneg %p1176_p2  ;;  %p1183_p5 = por %p1182_p4, %p1181_p11 }
  0x27   : > { %p1184_p7 = pnand %p1183_p5, %p1177_p12 }
  0x29   : > { %1187 = shalt.err (!%p1184_p7)
}
  0x2a   : > { %s1257_s26 = smov 64   ;;  %s1258_s28 = smov 4  }
  0x2b   : > { %1087 = dma.hbm_to_vmem [thread:$0]  (!%p1366_p13), %s1362_s16, 512, %s1370_s18, %s1372_s20, %s1257_s26, %s1257_s26, %s1258_s28  }
  0x2c   : > { %p1001_p9 = scmp.ge.s32.totalorder %s1254_s24, 1  ;;  %p235_p1 = scmp.lt.s32.totalorder %s1254_s24, 3 }
  0x2e   : > { %p236_p3 = pnand %p1001_p9, %p235_p1 }
  0x2f   : > { %s1403_s29 = sand.u32 (!%p236_p3), 1, %s1246_s22  }
  0x30   : > { %239 = sbr.rel (%p236_p3) target bundleno = 996 (0x3e4), region = 40  ;;  %s1002_s7 = sshll.u32 (!%p236_p3), %s1403_s29, 5 }
  0x31   : > { %s242_s12 = scalar_lea.sflag (!%p236_p3), [#allocation3], %s1403_s29  ;;  %s245_s13 = scalar_lea.vmem (!%p236_p3), [#allocation2], %s1002_s7 }
  0x37   : > { %1233 = dma.done.wait (%p1342_p6), %s242_s12, 512  }
  0x38   : > { %1235 = vsyncadd (%p1342_p6), %s242_s12, 4294966784  ;;  %v1150_v0 = vld [vmem:[%s1500_s1] sm:$0xff]   ;;  %vm324_vm0 = vcmask 130048   ;;  %v1152_v2 = vld [vmem:[%s245_s13 + $0x8] sm:$0xff]   ;;  %v1259_v28 = vmov 0.0   ;;  %vm595_vm1 = vcmask 64512  }
  0x39   : > { %v1151_v1 = vld [vmem:[%s245_s13] sm:$0xff]   ;;  %1048 = vmatprep.subr.bf16.mxu0 %v1150_v0  ;;  %v1153_v3 = vld [vmem:[%s245_s13 + $0x10] sm:$0xff]   ;;  %v1154_v4 = vld [vmem:[%s245_s13 + $0x18] sm:$0xff]   ;;  %s1437_s17 = scalar_lea.vmem [#allocation5], %s1002_s7  ;;  %vm1260_vm2 = vmmov 0   ;;  %s1032_s28 = sshll.u32 %s1320_s25, 9 }
  0x3a   : > { %1049 = vmatpush3.bf16.msra.mxu0 %v1150_v0  ;;  %1050 = vmatprep.mubr.msk.bf16.mxu0 %vm324_vm0, %v1151_v1  ;;  %v1155_v11 = vld [vmem:[%s1501_s2] sm:$0xff]   ;;  %s892_s26 = sshll.u32 %s1437_s17, 4  ;;  %s1451_s13 = scalar_lea.hbm %s1504_s5, %s1032_s28  ;;  %s1445_s26 = int_to_ptr.vmem [resolvable:$true] %s892_s26 }
  0x3b   : > { %1058 = vmatprep.subr.bf16.mxu1 %v1155_v11  ;;  %v1156_v18 = vld [vmem:[%s1502_s3] sm:$0xff]   ;;  %1074 = vmatprep.subr.bf16.mxu0 %v1259_v28  ;;  %s874_s16 = scalar_lea.sflag [#allocation4], %s1403_s29  ;;  %s1188_s18 = scalar_lea.vmem %s1445_s26, 512 }
  0x3c   : > { %1059 = vmatpush3.bf16.msra.mxu1 %v1155_v11  ;;  %v1157_v27 = vld [vmem:[%s1503_s4] sm:$0xff]   ;;  %p1189_p6 = scmp.ne.s32.totalorder %s1445_s26, %s1188_s18  ;;  %p1512_p11 = scmp.ne.s32.totalorder %s1509_s9, 0 }
  0x3d   : > { %1051 = vmatmul.mubr.msk.bf16.vlgmr.msra.gmra.mrb[0].mxu0 %vm324_vm0, %v1152_v2  ;;  %1064 = vmatprep.subr.bf16.mxu1 %v1156_v18  ;;  %s1261_s8 = smov [#allocation5]  }
  0x3e   : > { %1054 = vmatprep.mubr.msk.bf16.mxu0 %vm324_vm0, %v1153_v3  ;;  %1075 = vmatpush3.bf16.msra.mxu0 %v1157_v27  ;;  %p1190_p12 = pnand %p1189_p6, %p1512_p11  ;;  %s1192_s19 = sshll.u32 %s1261_s8, 4  ;;  %s1193_s19 = int_to_ptr.vmem [resolvable:$false] %s1192_s19 }
  0x3f   : > { %s1194_s20 = scalar_lea.vmem %s1193_s19, 1024  ;;  %p1195_p8 = scmp.lt.s32.totalorder %s1445_s26, %s1193_s19 }
  0x40   : > { %p1191_p13 = pneg %p1190_p12  ;;  %p1196_p10 = scmp.lt.s32.totalorder %s1194_s20, %s1188_s18 }
  0x42   : > { %p1197_p0 = por %p1196_p10, %p1195_p8 }
  0x44   : > { %p1198_p2 = pnand %p1197_p0, %p1191_p13 }
  0x45   : > { %1055 = vmatmul.mubr.msk.bf16.gmra.mrb[4].mxu0 %vm324_vm0, %v1154_v4 }
  0x46   : > { %1076 = vmatprep.mubr.msk.bf16.mxu0 %vm1260_vm2, %v1259_v28 }
 0x110   : > { %v1052_v5 = vpop.f32.mrb[0].mxu0 }
 0x111   : > { %v371_v6 = vpop.f32.mrb[1].mxu0 }
 0x112   : > { %v1053_v7 = vpop.f32.mrb[2].mxu0  ;;  %v1132_v8 = vpack.i.bf16 %v1052_v5, %v371_v6 }
 0x113   : > { %v374_v9 = vpop.f32.mrb[3].mxu0 }
 0x114   : > { %v1134_v10 = vpack.i.bf16 %v1053_v7, %v374_v9  ;;  %1133 = vxpose.xlu0.b32.start [1/2] (short) (narrow) %v1132_v8, 8 }
 0x118   : > { %1135 = vxpose.xlu0.b32.end [2/2] (short) (narrow) %v1134_v10, 8  ;;  %v1056_v12 = vpop.f32.mrb[4].mxu0 }
 0x119   : > { %v387_v13 = vpop.f32.mrb[5].mxu0 }
 0x11a   : > { %v1057_v14 = vpop.f32.mrb[6].mxu0  ;;  %v1141_v15 = vpack.i.bf16 %v1056_v12, %v387_v13 }
 0x11b   : > { %v390_v16 = vpop.f32.mrb[7].mxu0 }
 0x11c   : > { %v1143_v17 = vpack.i.bf16 %v1057_v14, %v390_v16  ;;  %1142 = vxpose.xlu1.b32.start [1/2] (short) (narrow) %v1141_v15, 8 }
 0x120   : > { %1144 = vxpose.xlu1.b32.end [2/2] (short) (narrow) %v1143_v17, 8 }
 0x194   : > { %v1136_v19 = vpop.trf.xlu0 }
 0x195   : > { %v1140_v20 = vunpack.i.h.bf16 %v1136_v19  ;;  %v1137_v21 = vunpack.i.l.bf16 %v1136_v19 }
 0x197   : > { %v530_v22 = vpack.c.bf16 %v1140_v20, %v1137_v21 }
 0x199   : > { %1060 = vmatprep.mubr.msk.bf16.mxu1 %vm324_vm0, %v530_v22 }
 0x19c   : > { %v1145_v23 = vpop.trf.xlu1 }
 0x19d   : > { %v1149_v24 = vunpack.i.h.bf16 %v1145_v23  ;;  %v1146_v25 = vunpack.i.l.bf16 %v1145_v23 }
 0x19f   : > { %v531_v26 = vpack.c.bf16 %v1149_v24, %v1146_v25 }
 0x1a1   : > { %1061 = vmatmul.mubr.msk.bf16.vlgmr.msra.gmra.mrb[0].mxu1 %vm324_vm0, %v531_v26 }
 0x1a2   : > { %1065 = vmatpush3.bf16.msra.mxu1 %v1156_v18  ;;  %1066 = vmatprep.mubr.msk.bf16.mxu1 %vm324_vm0, %v1151_v1 }
 0x1a9   : > { %1067 = vmatmul.mubr.msk.bf16.vlgmr.msra.gmra.mrb[4].mxu1 %vm324_vm0, %v1152_v2 }
 0x1aa   : > { %1070 = vmatprep.mubr.msk.bf16.mxu1 %vm324_vm0, %v1153_v3 }
 0x1b1   : > { %1071 = vmatmul.mubr.msk.bf16.gmra.mrb[8].mxu1 %vm324_vm0, %v1154_v4 }
 0x274   : > { %v1062_v29 = vpop.f32.mrb[0].mxu1 }
 0x275   : > { %598 = vst.msk [vmem:[%s1437_s17 + $0x10] sm:$0xff] %vm595_vm1, %v1062_v29  ;;  %v580_v30 = vpop.f32.mrb[1].mxu1 }
 0x276   : > { %596 = vst.msk [vmem:[%s1437_s17] sm:$0xff] %vm595_vm1, %v580_v30  ;;  %v1063_v31 = vpop.f32.mrb[2].mxu1 }
 0x277   : > { %599 = vst.msk [vmem:[%s1437_s17 + $0x18] sm:$0xff] %vm595_vm1, %v1063_v31  ;;  %v583_v32 = vpop.f32.mrb[3].mxu1 }
 0x278   : > { %597 = vst.msk [vmem:[%s1437_s17 + $0x8] sm:$0xff] %vm595_vm1, %v583_v32 }
 0x27c   : > { %v1068_v33 = vpop.f32.mrb[4].mxu1 }
 0x27d   : > { %705 = vxpose.xlu1.b32.start [1/2] (short) (narrow) %v1068_v33, 8  ;;  %v642_v34 = vpop.f32.mrb[5].mxu1 }
 0x27e   : > { %673 = vxpose.xlu0.b32.start [1/2] (short) (narrow) %v642_v34, 8  ;;  %v1069_v35 = vpop.f32.mrb[6].mxu1 }
 0x27f   : > { %v645_v36 = vpop.f32.mrb[7].mxu1 }
 0x281   : > { %706 = vxpose.xlu1.b32.end [2/2] (short) (narrow) %v1069_v35, 8 }
 0x282   : > { %674 = vxpose.xlu0.b32.end [2/2] (short) (narrow) %v645_v36, 8 }
 0x284   : > { %v1072_v37 = vpop.f32.mrb[8].mxu1 }
 0x285   : > { %769 = vxpose.xlu1.b32.start [1/2] (short) (narrow) %v1072_v37, 8  ;;  %v658_v38 = vpop.f32.mrb[9].mxu1 }
 0x286   : > { %737 = vxpose.xlu0.b32.start [1/2] (short) (narrow) %v658_v38, 8  ;;  %v1073_v39 = vpop.f32.mrb[10].mxu1 }
 0x287   : > { %v661_v40 = vpop.f32.mrb[11].mxu1 }
 0x289   : > { %770 = vxpose.xlu1.b32.end [2/2] (short) (narrow) %v1073_v39, 8 }
 0x28a   : > { %738 = vxpose.xlu0.b32.end [2/2] (short) (narrow) %v661_v40, 8 }
 0x2fd   : > { %v721_v41 = vpop.trf.xlu1 }
 0x2fe   : > { %v689_v42 = vpop.trf.xlu0 }
 0x2ff   : > { %v805_v45 = vcombine.low %v689_v42, %v721_v41 }
 0x305   : > { %v785_v43 = vpop.trf.xlu1 }
 0x306   : > { %v753_v44 = vpop.trf.xlu0 }
 0x307   : > { %v806_v46 = vcombine.low %v753_v44, %v785_v43 }
 0x309   : > { %v809_v47 = vpack.c.bf16 %v806_v46, %v805_v45 }
 0x30b   : > { %1077 = vmatmul.mubr.msk.bf16.vlgmr.msra.gmra.mrb[8].mxu0 %vm324_vm0, %v809_v47 }
 0x30c   : > { %1201 = shalt.err (!%p1198_p2)
}
 0x30d   : > { %s1202_s11 = scalar_lea.hbm %s1451_s13, 512  ;;  %s1206_s17 = scalar_lea.hbm %s1504_s5, 1024 }
 0x30e   : > { %p1203_p4 = scmp.ne.s32.totalorder %s1451_s13, %s1202_s11  ;;  %p1207_p9 = scmp.lt.u32.totalorder %s1451_s13, %s1504_s5 }
 0x30f   : > { %p1208_p1 = scmp.lt.u32.totalorder %s1206_s17, %s1202_s11  ;;  %p1210_p6 = scmp.lt.u32.totalorder %s1202_s11, %s1451_s13 }
 0x310   : > { %p1204_p5 = pnand %p1203_p4, %p1512_p11 }
 0x311   : > { %p1209_p3 = por %p1208_p1, %p1207_p9 }
 0x312   : > { %p1205_p7 = pneg %p1204_p5 }
 0x313   : > { %p1211_p12 = por %p1210_p6, %p1209_p3 }
 0x315   : > { %p1212_p13 = pnand %p1211_p12, %p1205_p7 }
 0x317   : > { %1215 = shalt.err (!%p1212_p13)
}
 0x318   : > { %s1262_s12 = smov 128   ;;  %s1263_s18 = smov 8   ;;  %vm868_vm3 = vcmask 27648  }
 0x319   : > { %1082 = dma.vmem_to_hbm [thread:$0]  (%p1512_p11), %s1445_s26, 512, %s1451_s13, %s874_s16, %s1262_s12, %s1262_s12, %s1263_s18  }
 0x31a   : > { %s1004_s8 = sshll.u32 %s1320_s25, 2 }
 0x31b   : > { %p282_p8 = scmp.lt.s32.totalorder %s1004_s8, 7 }
 0x31d   : > { %s1520_s8 = smov (!%p282_p8, %s1004_s8), 7 }
 0x31e   : > { %s1005_s19 = sshll.u32 %s1520_s8, 2 }
 0x31f   : > { %s285_s11 = scalar_lea.vmem %s1505_s6, %s1005_s19 }
 0x3de   : > { %v855_v48 = vpop.f32.mrb[8].mxu0 }
 0x3df   : > { %v864_v49 = vcombine.high %v855_v48, %v855_v48  ;;  %869 = vst.msk [vmem:[%s285_s11] sm:$0xf] %vm868_vm3, %v855_v48  ;;  %v1078_v50 = vpop.f32.mrb[9].mxu0 }
 0x3e0   : > { %v858_v51 = vpop.f32.mrb[10].mxu0 }
 0x3e1   : > { %870 = vst.msk [vmem:[%s285_s11 + $0x4] sm:$0xf] %vm868_vm3, %v864_v49  ;;  %v865_v52 = vcombine.high %v858_v51, %v858_v51  ;;  %v1079_v53 = vpop.f32.mrb[11].mxu0  ;;  %871 = vst.msk [vmem:[%s285_s11 + $0x8] sm:$0xf] %vm868_vm3, %v858_v51 }
 0x3e3   : > { %872 = vst.msk [vmem:[%s285_s11 + $0xc] sm:$0xf] %vm868_vm3, %v865_v52 }
 0x3e4 PF: > { %s911_s25 = sand.u32 1, %s1242_s21   ;;  %p1513_p11 = scmp.ne.s32.totalorder %s1510_s10, 0 }
 0x3e5   : > { %p1514_p10 = scmp.ge.s32.totalorder %s1254_s24, 2  ;;  %s912_s9 = scalar_lea.sflag [#allocation4], %s911_s25 }
 0x3e7   : > { %p1089_p0 = pnand %p1514_p10, %p1513_p11 }
 0x3e9   : > { %1237 = dma.done.wait (!%p1089_p0), %s912_s9, 512  }
 0x3ea   : > { %1239 = vsyncadd (!%p1089_p0), %s912_s9, 4294966784  ;;  %p20_p2 = scmp.ge.s32.totalorder %s1324_s27, 4   ;;  %s1515_s21 = smov %s1246_s22 }
 0x3eb   : > { %s1516_s22 = smov %s1250_s23  ;;  %s1517_s23 = smov %s1336_s30 }
 0x3ec   : > { %s1518_s24 = smov %s1324_s27  ;;  %22 = sbr.rel (!%p20_p2) target bundleno = 5 (0x5), region = 97 }
 0x3f3   :  { %925 = vsyncpa [#allocation3], 1 }
 0x3f4   :  { %927 = vsyncpa [#allocation3 + $0x1], 1 }
 0x3f5   :  { %928 = vsyncpa [#allocation4], 1 }
 0x3f6   :  { %930 = vsyncpa [#allocation4 + $0x1], 1 }

</bundles_post_ra>
